<compile_context>
chip_gen: v7x
topology: tpu7x:2x2x1
jax: 0.10.0
libtpu: 0.0.40
codegen_flags: <defaults>
</compile_context>

<pallas_src>
import functools

import jax
import jax.numpy as jnp
from jax import lax
from jax.experimental import pallas as pl
from jax.experimental.pallas import tpu as pltpu


def cdae_forward_kernel(p_ref, w_ref, o_ref, *, lanes_out):
    """One batch chunk.

    p_ref: (9*Cin+1, 4*lanes_out) bf16 im2col patches (+ ones row); lane order
           within the block is (pool_pos, image, out_pixel).
    w_ref: (Cout, 9*Cin+1)        bf16 weights, BN(eval) scale folded in; the
           last column is the fused conv-bias + BN shift.
    o_ref: (Cout, lanes_out)      pooled output block; lane order (image, out_pixel).
    """
    # Single MXU call (K = 9*Cin+1), f32 accumulate.  The ones row x shift
    # column folds conv-bias + BN shift into the matmul -> no separate add.
    acc = jnp.dot(w_ref[...], p_ref[...], preferred_element_type=jnp.float32)

    # 2x2 max-pool: the four candidates of every pooled pixel live in four
    # CONTIGUOUS lane slices of width lanes_out -> plain vmax, no relayout.
    m = lanes_out
    pooled = jnp.maximum(
        jnp.maximum(acc[:, 0 * m:1 * m], acc[:, 1 * m:2 * m]),
        jnp.maximum(acc[:, 2 * m:3 * m], acc[:, 3 * m:4 * m]))

    # ReLU after pool == pool after ReLU (max is monotone); 4x less VPU work.
    o_ref[...] = jnp.maximum(pooled, 0.0).astype(o_ref.dtype)


def apply_noise_mask(x, key):
    """Denoising keep-mask: keep element iff N(0, 0.1) sample > -0.1."""
    noise = jax.random.normal(key, x.shape, dtype=x.dtype) * 0.1
    return x * (noise > -0.1).astype(x.dtype)


def fuse_params(params, eps=1e-5, dtype=jnp.bfloat16):
    """Fold BN(eval) scale into the conv weights and bias+shift into one extra
    K column.  Returns (Cout, 9*Cin+1); K order is (dy, dx, cin) [+ shift]."""
    w_oihw = params["conv_w"]                                   # (Cout, Cin, 3, 3)
    Cout, Cin = w_oihw.shape[0], w_oihw.shape[1]
    scale = params["bn_gamma"] / jnp.sqrt(params["bn_rvar"] + eps)
    shift = params["bn_beta"] + scale * (params["conv_b"] - params["bn_rmean"])
    w_mat = jnp.transpose(w_oihw, (0, 2, 3, 1)).reshape(Cout, 9 * Cin)
    w_aug = jnp.concatenate([scale[:, None] * w_mat, shift[:, None]], axis=1)
    return w_aug.astype(dtype)


def build_patches(x_noisy, imgs_per_block, dtype=jnp.bfloat16):
    """(N,Cin,H,W) -> (9*Cin+1, nb*4*ipb*(H//2)*(W//2)) im2col matrix.

    K order is (dy, dx, cin) [+ a trailing ones row for the shift column].
    Lane order is (batch_block, pool_pos=(py,px), image_in_block, i, j), i.e.
    column holds the 3x3 neighborhood of input pixel (2i+py, 2j+px).
    """
    N, Cin, H, W = x_noisy.shape
    Ho, Wo = H // 2, W // 2
    nb = N // imgs_per_block
    xp = jnp.pad(x_noisy, ((0, 0), (0, 0), (1, 1), (1, 1)))
    taps = [xp[:, :, dy:dy + H, dx:dx + W] for dy in range(3) for dx in range(3)]
    t = jnp.stack(taps, axis=1)                                  # (n, tap, c, h, w)
    t = t.reshape(nb, imgs_per_block, 9, Cin, Ho, 2, Wo, 2)      # (blk,img,tap,c,i,py,j,px)
    t = jnp.transpose(t, (2, 3, 0, 5, 7, 1, 4, 6))               # (tap,c,blk,py,px,img,i,j)
    patches = t.reshape(9 * Cin, nb * 4 * imgs_per_block * Ho * Wo)
    ones = jnp.ones((1, patches.shape[1]), patches.dtype)
    return jnp.concatenate([patches, ones], axis=0).astype(dtype)


def _pick_images_per_block(n, m, k_aug, itemsize, vmem_budget=8 << 20):
    """Largest batch chunk whose double-buffered patch block fits the VMEM
    budget, preferring chunks with a multiple-of-128 output lane count so the
    store stays unmasked (safe on v7x's 64 MiB VMEM as shapes grow)."""
    def patch_bytes(d):
        return 2 * k_aug * 4 * d * m * itemsize                  # x2 double-buffer
    divisors = [d for d in range(1, n + 1)
                if n % d == 0 and patch_bytes(d) <= vmem_budget]
    if not divisors:
        return 1
    lane_dense = [d for d in divisors if (d * m) % 128 == 0]
    return max(lane_dense) if lane_dense else max(divisors)


def cdae_forward(x_nchw, params, noise_key, *, compute_dtype=jnp.bfloat16):
    """Forward of CDAutoEncoder (conv_num=1, eval mode). Input/output NCHW."""
    N, Cin, H, W = x_nchw.shape
    Cout = params["conv_w"].shape[0]
    assert H % 2 == 0 and W % 2 == 0, "MaxPool2d(2,2) path assumes even H, W"
    Ho, Wo = H // 2, W // 2
    M = Ho * Wo
    K_aug = 9 * Cin + 1

    # Noise mask + pad + transpose + im2col: fuse into one XLA producer (jit).
    x_noisy = apply_noise_mask(x_nchw, noise_key)

    ipb = _pick_images_per_block(N, M, K_aug, jnp.dtype(compute_dtype).itemsize)
    nb = N // ipb
    lanes_out = ipb * M                                           # output lanes / step

    patches = build_patches(x_noisy, ipb, compute_dtype)          # (K_aug, nb*4*lanes_out)
    w_aug = fuse_params(params, dtype=compute_dtype)              # (Cout, K_aug)

    kernel = functools.partial(cdae_forward_kernel, lanes_out=lanes_out)

    flops = 2 * Cout * K_aug * 4 * N * M
    bytes_accessed = (patches.size * patches.dtype.itemsize
                      + w_aug.size * w_aug.dtype.itemsize
                      + Cout * N * M * 4)

    y_flat = pl.pallas_call(
        kernel,
        out_shape=jax.ShapeDtypeStruct((Cout, N * M), x_nchw.dtype),
        grid_spec=pltpu.PrefetchScalarGridSpec(
            num_scalar_prefetch=0,
            grid=(nb,),
            in_specs=[
                pl.BlockSpec((K_aug, 4 * lanes_out), lambda b: (0, b)),
                pl.BlockSpec((Cout, K_aug), lambda b: (0, 0)),
            ],
            out_specs=pl.BlockSpec((Cout, lanes_out), lambda b: (0, b)),
        ),
        compiler_params=pltpu.CompilerParams(
            dimension_semantics=("parallel",)),
        cost_estimate=pl.CostEstimate(flops=flops, transcendentals=0,
                                      bytes_accessed=bytes_accessed),
    )(patches, w_aug)

    # (Cout, N*Ho*Wo) with lane order (n, i, j) -> NCHW (tiny wrapper transpose).
    return jnp.transpose(y_flat.reshape(Cout, N, Ho, Wo), (1, 0, 2, 3))


def ref_forward(x_noisy_nchw, params):
    """Full-precision pure-JAX reference: conv + BN(eval) + ReLU + MaxPool2x2."""
    eps = 1e-5
    conv = lax.conv_general_dilated(
        x_noisy_nchw, params["conv_w"], window_strides=(1, 1),
        padding=((1, 1), (1, 1)),
        dimension_numbers=("NCHW", "OIHW", "NCHW"),
        precision=lax.Precision.HIGHEST)
    conv = conv + params["conv_b"].reshape(1, -1, 1, 1)
    bn = ((conv - params["bn_rmean"].reshape(1, -1, 1, 1))
          / jnp.sqrt(params["bn_rvar"].reshape(1, -1, 1, 1) + eps)
          * params["bn_gamma"].reshape(1, -1, 1, 1)
          + params["bn_beta"].reshape(1, -1, 1, 1))
    act = jnp.maximum(bn, 0.0)
    return lax.reduce_window(act, -jnp.inf, lax.max,
                             window_dimensions=(1, 1, 2, 2),
                             window_strides=(1, 1, 2, 2), padding="VALID")


def ref_forward_folded(x_noisy_nchw, w_aug, cin):
    """Reference with the SAME bf16 quantization + BN folding as the kernel
    (isolates accumulation-order differences -> tight tolerance)."""
    cout = w_aug.shape[0]
    x_q = x_noisy_nchw.astype(w_aug.dtype).astype(jnp.float32)
    w_q = jnp.transpose(
        w_aug[:, :9 * cin].astype(jnp.float32).reshape(cout, 3, 3, cin),
        (0, 3, 1, 2))                                             # (dy,dx,cin) -> OIHW
    shift_q = w_aug[:, 9 * cin].astype(jnp.float32)
    conv = lax.conv_general_dilated(
        x_q, w_q, window_strides=(1, 1), padding=((1, 1), (1, 1)),
        dimension_numbers=("NCHW", "OIHW", "NCHW"),
        precision=lax.Precision.HIGHEST)
    act = jnp.maximum(conv + shift_q.reshape(1, -1, 1, 1), 0.0)
    return lax.reduce_window(act, -jnp.inf, lax.max,
                             window_dimensions=(1, 1, 2, 2),
                             window_strides=(1, 1, 2, 2), padding="VALID")


if __name__ == "__main__":
    # Small shapes consistent with the module: N=2, input_size=4, output_size=8, 16x16.
    N, Cin, Cout, H, W = 2, 4, 8, 16, 16

    root = jax.random.PRNGKey(0)
    k_x, k_noise, k_w, k_b, k_g, k_be, k_rm, k_rv = jax.random.split(root, 8)

    x = jax.random.normal(k_x, (N, Cin, H, W), dtype=jnp.float32)

    # Deterministic parameter init (shapes from nn.Conv2d / nn.BatchNorm2d).
    fan_in = Cin * 3 * 3
    bound = 1.0 / jnp.sqrt(jnp.float32(fan_in))
    params = {
        "conv_w": jax.random.uniform(k_w, (Cout, Cin, 3, 3), jnp.float32, -bound, bound),
        "conv_b": jax.random.uniform(k_b, (Cout,), jnp.float32, -bound, bound),
        "bn_gamma": 1.0 + 0.1 * jax.random.normal(k_g, (Cout,), jnp.float32),
        "bn_beta": 0.05 * jax.random.normal(k_be, (Cout,), jnp.float32),
        "bn_rmean": 0.02 * jax.random.normal(k_rm, (Cout,), jnp.float32),
        "bn_rvar": 1.0 + 0.1 * jnp.abs(jax.random.normal(k_rv, (Cout,), jnp.float32)),
    }

    fwd = jax.jit(cdae_forward)
    y = jax.block_until_ready(fwd(x, params, k_noise))
    assert y.shape == (N, Cout, H // 2, W // 2), y.shape

    x_noisy = apply_noise_mask(x, k_noise)

    # Tight check: identical bf16 quantization + folding, differs only in
    # accumulation order -> must agree to ~1e-3.
    ref_q = ref_forward_folded(x_noisy, fuse_params(params), Cin)
    err_q = float(jnp.max(jnp.abs(y - ref_q)))
    assert err_q < 1e-3, f"folded/quantized reference mismatch: {err_q}"

    # Semantic check vs. the full-precision module forward; bf16 operand
    # quantization is the only difference, so a few e-3 is expected.
    ref_f = ref_forward(x_noisy, params)
    err_f = float(jnp.max(jnp.abs(y - ref_f)))
    assert err_f < 5e-2, f"full-precision reference mismatch: {err_f}"

    print("KERNEL_OK")
</pallas_src>

<mosaic_0001>
module attributes {stable_mosaic.version = 11 : i64} {
  func.func @cdae_forward_kernel(%arg0: i32, %arg1: memref<37x512xbf16, #tpu.memory_space<vmem>>, %arg2: memref<8x37xbf16, #tpu.memory_space<vmem>>, %arg3: memref<8x128xf32, #tpu.memory_space<vmem>>) attributes {dimension_semantics = [#tpu.dimension_semantics<parallel>], iteration_bounds = array<i64: 1>, scalar_prefetch = 0 : i64, scratch_operands = 0 : i64, tpu.core_type = #tpu.core_type<tc>, window_params = [{transform_indices = @transform_0, window_bounds = array<i64: 37, 512>}, {pipeline_mode = #tpu.pipeline_mode<synchronous>, transform_indices = @transform_1, window_bounds = array<i64: 8, 37>}, {transform_indices = @transform_2, window_bounds = array<i64: 8, 128>}]} {
    %c0 = arith.constant 0 : index
    %c0_0 = arith.constant 0 : index
    %0 = vector.load %arg2[%c0, %c0_0] : memref<8x37xbf16, #tpu.memory_space<vmem>>, vector<8x37xbf16>
    %c0_1 = arith.constant 0 : index
    %c0_2 = arith.constant 0 : index
    %1 = vector.load %arg1[%c0_1, %c0_2] : memref<37x512xbf16, #tpu.memory_space<vmem>>, vector<37x512xbf16>
    %cst = arith.constant dense<0.000000e+00> : vector<8x512xf32>
    %2 = tpu.matmul %0, %1, %cst {dimension_numbers = #tpu.dot_dimension_numbers<[1], [0], [0], [1], [0, 0, 1, 1], [], []>} : vector<8x37xbf16>, vector<37x512xbf16>, vector<8x512xf32> -> vector<8x512xf32>
    %3 = vector.extract_strided_slice %2 {offsets = [0, 0], sizes = [8, 128], strides = [1, 1]} : vector<8x512xf32> to vector<8x128xf32>
    %4 = vector.extract_strided_slice %2 {offsets = [0, 128], sizes = [8, 128], strides = [1, 1]} : vector<8x512xf32> to vector<8x128xf32>
    %5 = arith.maximumf %3, %4 : vector<8x128xf32>
    %6 = vector.extract_strided_slice %2 {offsets = [0, 256], sizes = [8, 128], strides = [1, 1]} : vector<8x512xf32> to vector<8x128xf32>
    %7 = vector.extract_strided_slice %2 {offsets = [0, 384], sizes = [8, 128], strides = [1, 1]} : vector<8x512xf32> to vector<8x128xf32>
    %8 = arith.maximumf %6, %7 : vector<8x128xf32>
    %9 = arith.maximumf %5, %8 : vector<8x128xf32>
    %cst_3 = arith.constant 0.000000e+00 : f32
    %10 = vector.broadcast %cst_3 : f32 to vector<8x128xf32>
    %11 = arith.maximumf %9, %10 : vector<8x128xf32>
    %c0_4 = arith.constant 0 : index
    %c0_5 = arith.constant 0 : index
    %12 = vector.load %arg3[%c0_4, %c0_5] : memref<8x128xf32, #tpu.memory_space<vmem>>, vector<8x128xf32>
    tpu.vector_store %arg3[%c0_4, %c0_5], %11 {strides = array<i32>} : memref<8x128xf32, #tpu.memory_space<vmem>>, vector<8x128xf32>,
    return
  }
  func.func @transform_0(%arg0: i32) -> (i32, i32) {
    %c0_i32 = arith.constant 0 : i32
    %c0_i32_0 = arith.constant 0 : i32
    return %c0_i32, %arg0 : i32, i32
  }
  func.func @transform_1(%arg0: i32) -> (i32, i32) {
    %c0_i32 = arith.constant 0 : i32
    %c0_i32_0 = arith.constant 0 : i32
    %c0_i32_1 = arith.constant 0 : i32
    return %c0_i32, %c0_i32_0 : i32, i32
  }
  func.func @transform_2(%arg0: i32) -> (i32, i32) {
    %c0_i32 = arith.constant 0 : i32
    %c0_i32_0 = arith.constant 0 : i32
    return %c0_i32, %arg0 : i32, i32
  }
}

</mosaic_0001>

<bundles_post_ra>
// kernel: cdae_forward.1
= control target key start
LH: loop header
LB: loop body
LE: loop exit
PB: predicated region body
PF: predicated region fallthrough
CT: control target
= control target key end

     0   :  { %vm77_vm0 = vcmask 1041408   ;;  %v216_v1 = vmov 0   ;;  %vm78_vm1 = vcmask 1042432   ;;  %v217_v3 = vmov 65535   ;;  %s269_s0 = inlined_call_operand.vmem [shape: bf16[37,512], index: 0, kind: input, shape index: {}]   ;;  %s270_s1 = inlined_call_operand.vmem [shape: bf16[8,37], index: 1, kind: input, shape index: {}]   ;;  %s271_s2 = inlined_call_operand.vmem [shape: f32[8,128], index: 2, kind: output, shape index: {}]  }
   0x1   :  { %v200_v0 = vld [vmem:[%s269_s0 + $0x4] ss:$16 sps:$4 sm:$0xff]   ;;  %125 = vmatprep.mubr.bf16.mxu0 %v216_v1  ;;  %166 = vmatprep.mubr.bf16.mxu1 %v216_v1  ;;  %v202_v2 = vld [vmem:[%s269_s0 + $0xc] ss:$16 sps:$4 sm:$0xff]   ;;  %v79_v4 = vsel %vm77_vm0, 4294967295, %v217_v3  ;;  %vm73_vm2 = vcmask 302080  }
   0x2   :  { %93 = vmatprep.subr.bf16.mxu0 %v200_v0  ;;  %v204_v5 = vld [vmem:[%s269_s0] ss:$16 sps:$4 sm:$0xff]   ;;  %v205_v6 = vld [vmem:[%s269_s0 + $0x8] ss:$16 sps:$4 sm:$0xff]   ;;  %134 = vmatprep.subr.bf16.mxu1 %v202_v2  ;;  %v206_v7 = vld [vmem:[%s269_s0 + $0x24] ss:$16 sps:$4 sm:$0xff]  }
   0x3   :  { %94 = vmatpush1.bf16.msra.mxu0 %v204_v5  ;;  %135 = vmatpush1.bf16.msra.mxu1 %v205_v6  ;;  %v208_v8 = vld [vmem:[%s269_s0 + $0x2c] ss:$16 sps:$4 sm:$0xff]   ;;  %v210_v9 = vld [vmem:[%s269_s0 + $0x20] ss:$16 sps:$4 sm:$0xff]   ;;  %v80_v10 = vsel %vm78_vm1, %v79_v4, 0 }
   0x4   :  { %95 = vmatprep.subr.bf16.mxu0 %v206_v7  ;;  %v211_v11 = vld [vmem:[%s269_s0 + $0x28] ss:$16 sps:$4 sm:$0xff]   ;;  %v21_v12 = vld [vmem:[%s269_s0 + $0x40] sm:$0x77]  ;;  %136 = vmatprep.subr.bf16.mxu1 %v208_v8 }
   0x5   :  { %v22_v13 = vld [vmem:[%s269_s0 + $0x48] sm:$0x77]  ;;  %v193_v14 = vcombine.high %v21_v12, %v21_v12  ;;  %v192_v16 = vcombine.low %v21_v12, %v21_v12  ;;  %v12_v22 = vld [vmem:[%s270_s1] sm:$0xf] }
   0x6   :  { %v195_v15 = vcombine.high %v22_v13, %v22_v13  ;;  %v194_v17 = vcombine.low %v22_v13, %v22_v13 }
   0x7   :  { %96 = vmatpush1.bf16.msra.mxu0 %v210_v9  ;;  %137 = vmatpush1.bf16.msra.mxu1 %v211_v11  ;;  %v85_v18 = vand.u32 %v193_v14, %v80_v10  ;;  %v82_v20 = vand.u32 %v192_v16, %v80_v10 }
   0x8   :  { %v91_v19 = vand.u32 %v195_v15, %v80_v10  ;;  %v88_v21 = vand.u32 %v194_v17, %v80_v10 }
   0x9   :  { %97 = vmatprep.subr.bf16.mxu0 %v85_v18 }
   0xa   :  { %138 = vmatprep.subr.bf16.mxu1 %v91_v19 }
   0xb   :  { %98 = vmatpush1.bf16.msra.mxu0 %v82_v20  ;;  %139 = vmatpush1.bf16.msra.mxu1 %v88_v21 }
   0xe   :  { %196 = vmatmul.mubr.msk.bf16.vlgmr.msra.gmra.mrb[0].mxu0 %vm73_vm2, %v12_v22  ;;  %197 = vmatmul.mubr.msk.bf16.vlgmr.msra.gmra.mrb[0].mxu1 %vm73_vm2, %v12_v22 }
  0xe1   :  { %v127_v23 = vpop.f32.mrb[0].mxu0  ;;  %v168_v24 = vpop.f32.mrb[0].mxu1 }
  0xe2   :  { %v129_v25 = vpop.f32.mrb[1].mxu0  ;;  %v170_v26 = vpop.f32.mrb[1].mxu1 }
  0xe3   :  { %v175_v27 = vmax.f32 %v127_v23, %v129_v25  ;;  %v176_v28 = vmax.f32 %v168_v24, %v170_v26  ;;  %v131_v29 = vpop.f32.mrb[2].mxu0  ;;  %v172_v30 = vpop.f32.mrb[2].mxu1 }
  0xe4   :  { %v132_v31 = vpop.f32.mrb[3].mxu0  ;;  %v173_v32 = vpop.f32.mrb[3].mxu1 }
  0xe5   :  { %v177_v33 = vmax.f32 %v175_v27, %v176_v28 }
  0xe7   :  { %v178_v34 = vmax.f32 %v177_v33, 0.0 }
  0xe9   :  { %179 = vst [vmem:[%s271_s2] sm:$0xff] %v178_v34 }

</bundles_post_ra>
